<compile_context>
chip_gen: v5e
topology: v5e:2x2
jax: 0.10.0
libtpu: 0.0.40
codegen_flags: <defaults>
</compile_context>

<pallas_src>
import math
import dataclasses

import jax
import jax.numpy as jnp
from jax.experimental import pallas as pl
from jax.experimental.pallas import tpu as pltpu


# ---------------------------------------------------------------------------
# Module "config" mirroring the PyTorch layer_defs
# ---------------------------------------------------------------------------
@dataclasses.dataclass(frozen=True)
class LayerDef:
    in_chans: int
    out_chans: int
    kernel_size: int


@dataclasses.dataclass(frozen=True)
class TimeDerivative:
    dq_dt: jnp.ndarray
    dp_dt: jnp.ndarray


def _round_up(x, m):
    return ((x + m - 1) // m) * m


# ---------------------------------------------------------------------------
# Pallas kernel
# ---------------------------------------------------------------------------
def _make_cnn_kernel(layer_meta, L, n_lanes):
    """layer_meta: tuple of (cin_p, cout_p, kernel_size) per layer (static).

    In-kernel activation layout: (C_p, n_lanes) with n_lanes = B_blk * L_pad;
    each batch element owns one L_pad-wide lane slab.
    """
    n_layers = len(layer_meta)

    # Every tap shift used by any layer (static, known at trace time).
    all_shifts = sorted({k - (ksz - 1) // 2
                         for (_, _, ksz) in layer_meta for k in range(ksz)})

    def kernel(*refs):
        # refs = [lane_idx, x, w0, b0, w1, b1, ..., out]
        lane_ref = refs[0]
        x_ref = refs[1]
        out_ref = refs[-1]
        wb = refs[2:-1]

        lane = lane_ref[...]                    # (1, n_lanes) int32 = l % L_pad

        # Hoisted per-shift edge masks (the same shifts recur in every layer;
        # JAX does not CSE iota/compare, so build them exactly once).
        # s > 0 : tap reads x[:, l+s] -> must be zero when l+s >= L (zero
        #         'same' pad); this also kills cross-batch-slab leakage.
        # s < 0 : tap reads x[:, l-|s|] -> zero when l < |s|.
        masks = {}
        for s in all_shifts:
            if s > 0:
                masks[s] = lane < (L - s)
            elif s < 0:
                masks[s] = lane >= (-s)

        x = x_ref[...].astype(jnp.float32)      # (C0_p, n_lanes)
        for i, (cin_p, cout_p, ksz) in enumerate(layer_meta):
            pad = (ksz - 1) // 2
            b = wb[2 * i + 1][...]               # (cout_p, 1) -> lane broadcast

            # K per-tap MXU matmuls accumulated in f32 (no im2col concat).
            y = None
            for k in range(ksz):
                s = k - pad                      # this tap reads x[:, l + s]
                if s == 0:
                    tap = x
                else:
                    tap = pltpu.roll(x, (-s) % n_lanes, axis=1)   # XLU shift
                    tap = jnp.where(masks[s], tap, 0.0)
                w_k = wb[2 * i][k]               # (cout_p, cin_p)
                contrib = jnp.dot(w_k, tap, preferred_element_type=jnp.float32)
                y = contrib if y is None else y + contrib
            y = y + b

            if i < n_layers - 1:
                y = jnp.maximum(y, 0.0)          # plain ReLU; pad lanes may hold
                                                 # garbage but can never reach a
                                                 # valid lane (masks are tight).
            x = y

        out_ref[...] = x.astype(out_ref.dtype)

    return kernel


# ---------------------------------------------------------------------------
# Wrapper: layout plumbing + pallas_call
# ---------------------------------------------------------------------------
def cnn_forward(q, p, torch_params, io_dtype=jnp.float32):
    """Pallas equivalent of CNN.forward(q, p) with predict_type='deriv',
    dim=1, padding_mode='zeros', no extra_data / spatial_reshape.

    q: (N, L, Cq)   p: (N, L, Cp)
    torch_params: list of (w, b) in PyTorch Conv1d layout:
                  w: (Cout, Cin, K), b: (Cout,)
    io_dtype: HBM activation dtype (use jnp.bfloat16 on v6e/v7x to halve DMA
              bytes; math always accumulates in f32).
    """
    orig_q_shape, orig_p_shape = q.shape, p.shape
    cq, cp = q.shape[-1], p.shape[-1]

    # torch.cat((q, p), dim=-1) then movedim(-1, 1)  ->  (N, C0, L)
    x = jnp.moveaxis(jnp.concatenate([q, p], axis=-1), -1, 1).astype(jnp.float32)
    N, C0, L = x.shape
    assert torch_params[0][0].shape[1] == C0

    # ---- fold PyTorch (Cout, Cin, K) weights into per-tap (K, Cout_p, Cin_p)
    C0_p = _round_up(C0, 8)
    flat_params = []
    layer_meta = []
    cin_prev_p = C0_p
    for (w, b) in torch_params:
        cout, cin, ksz = w.shape
        assert ksz % 2 == 1, "only odd kernel sizes (symmetric 'same' pad)"
        cin_p = _round_up(cin, 8)
        cout_p = _round_up(cout, 8)
        assert cin_p == cin_prev_p
        w_p = jnp.zeros((ksz, cout_p, cin_p), jnp.float32)
        w_p = w_p.at[:, :cout, :cin].set(
            jnp.transpose(w, (2, 0, 1)).astype(jnp.float32))
        b_p = jnp.zeros((cout_p, 1), jnp.float32).at[:cout, 0].set(
            b.astype(jnp.float32))
        flat_params.extend([w_p, b_p])
        layer_meta.append((cin_p, cout_p, ksz))
        cin_prev_p = cout_p

    c_last = torch_params[-1][0].shape[0]
    c_last_p = layer_meta[-1][1]
    assert c_last == cq + cp, "last layer out_chans must equal cq + cp"

    # ---- tiling choices ----------------------------------------------------
    L_pad = max(128, _round_up(L, 128))
    max_cp = max(max(ci, co) for (ci, co, _) in layer_meta)

    # Pack up to 8 batch elements per grid step along the lane axis, but keep
    # >= 2 grid steps when the batch allows (v7x dual TensorCores) and respect
    # a per-step VMEM budget (v7x has only 64 MiB physical).
    B_blk = 8
    while B_blk > 1 and N < 2 * B_blk:
        B_blk //= 2
    while B_blk > 1 and (C0_p + c_last_p + 6 * max_cp) * B_blk * L_pad * 4 > 8 * 2**20:
        B_blk //= 2
    N_pad = _round_up(N, B_blk)
    G = N_pad // B_blk
    BL = B_blk * L_pad

    # ---- lane-packed HBM layout: (G, C0_p, B_blk * L_pad) -------------------
    x = jnp.pad(x, ((0, N_pad - N), (0, C0_p - C0), (0, L_pad - L)))
    x = x.reshape(G, B_blk, C0_p, L_pad)
    x = jnp.transpose(x, (0, 2, 1, 3)).reshape(G, C0_p, BL).astype(io_dtype)

    # Lane index within each batch slab (small VMEM-resident input; avoids an
    # in-kernel integer modulo for the per-slab masks).
    lane_idx = jnp.tile(jnp.arange(L_pad, dtype=jnp.int32), B_blk)[None, :]

    # ---- specs ---------------------------------------------------------------
    in_specs = [
        pl.BlockSpec((1, BL), lambda g: (0, 0)),                # lane_idx (resident)
        pl.BlockSpec((None, C0_p, BL), lambda g: (g, 0, 0)),    # activations
    ]
    for arr in flat_params:   # weights / biases: constant index_map -> VMEM-resident
        in_specs.append(pl.BlockSpec(arr.shape, lambda g, nd=arr.ndim: (0,) * nd))
    out_spec = pl.BlockSpec((None, c_last_p, BL), lambda g: (g, 0, 0))

    flops = 2 * N * L * sum(int(w.shape[0]) * int(w.shape[1]) * int(w.shape[2])
                            for (w, _) in torch_params)
    itemsize = jnp.dtype(io_dtype).itemsize
    bytes_accessed = int((x.size + G * c_last_p * BL) * itemsize
                         + sum(a.size * a.dtype.itemsize for a in flat_params))
    cost = pl.CostEstimate(flops=flops, transcendentals=0,
                           bytes_accessed=bytes_accessed)

    vmem_limit = int(min(64 * 2**20,
                         max(32 * 2**20,
                             8 * (C0_p + c_last_p + 6 * max_cp) * BL * 4)))

    y = pl.pallas_call(
        _make_cnn_kernel(tuple(layer_meta), L, BL),
        out_shape=jax.ShapeDtypeStruct((G, c_last_p, BL), io_dtype),
        grid_spec=pltpu.PrefetchScalarGridSpec(
            num_scalar_prefetch=0,
            grid=(G,),
            in_specs=in_specs,
            out_specs=out_spec,
        ),
        compiler_params=pltpu.CompilerParams(
            dimension_semantics=("parallel",),
            vmem_limit_bytes=vmem_limit),
        cost_estimate=cost,
    )(lane_idx, x, *flat_params)

    # ---- unpack: (G, C_last_p, B_blk*L_pad) -> (N, L, C_last) ----------------
    y = y.astype(jnp.float32).reshape(G, c_last_p, B_blk, L_pad)
    y = jnp.transpose(y, (0, 2, 1, 3)).reshape(N_pad, c_last_p, L_pad)
    y = jnp.moveaxis(y[:N, :c_last, :L], 1, -1)         # (N, L, C_last)
    dq = y[..., :cq].reshape(orig_q_shape)
    dp = y[..., cq:cq + cp].reshape(orig_p_shape)
    return TimeDerivative(dq_dt=dq, dp_dt=dp)


# ---------------------------------------------------------------------------
# Deterministic parameter init (PyTorch Conv1d default: U(-1/sqrt(fan_in), ·))
# ---------------------------------------------------------------------------
def init_params(key, layer_defs):
    torch_params = []   # (Cout, Cin, K) / (Cout,)  -- PyTorch layout
    for ld in layer_defs:
        key, kw, kb = jax.random.split(key, 3)
        fan_in = ld.in_chans * ld.kernel_size
        bound = 1.0 / math.sqrt(fan_in)
        w = jax.random.uniform(kw, (ld.out_chans, ld.in_chans, ld.kernel_size),
                               jnp.float32, -bound, bound)
        b = jax.random.uniform(kb, (ld.out_chans,), jnp.float32, -bound, bound)
        torch_params.append((w, b))
    return torch_params


# ---------------------------------------------------------------------------
# Pure-JAX reference (NCL, PyTorch conv semantics) for correctness checks
# ---------------------------------------------------------------------------
def reference_forward(q, p, torch_params):
    x = jnp.concatenate([q, p], axis=-1).astype(jnp.float32)   # (N, L, C)
    x = jnp.moveaxis(x, -1, 1)                                  # (N, C, L)
    for i, (w, b) in enumerate(torch_params):
        pad = (w.shape[-1] - 1) // 2
        x = jax.lax.conv_general_dilated(
            x, w, window_strides=(1,), padding=[(pad, pad)],
            dimension_numbers=('NCH', 'OIH', 'NCH'))
        x = x + b[None, :, None]
        if i < len(torch_params) - 1:
            x = jnp.maximum(x, 0.0)
    y = jnp.moveaxis(x, 1, -1)                                  # (N, L, C)
    cq = q.shape[-1]
    return y[..., :cq], y[..., cq:cq + p.shape[-1]]


# ---------------------------------------------------------------------------
if __name__ == "__main__":
    # q/p have 2 channels each -> 4 total in/out channels, one hidden conv
    # layer with 8 channels, kernel_size=3.
    layer_defs = [
        LayerDef(in_chans=4, out_chans=8, kernel_size=3),
        LayerDef(in_chans=8, out_chans=4, kernel_size=3),
    ]

    key = jax.random.PRNGKey(0)
    key, kq, kp, kparams = jax.random.split(key, 4)
    torch_params = init_params(kparams, layer_defs)

    # --- small case (degenerates to B_blk=1, 2 parallel grid steps) ---------
    N, L, Cq, Cp = 2, 16, 2, 2
    q = jax.random.normal(kq, (N, L, Cq), jnp.float32)
    p = jax.random.normal(kp, (N, L, Cp), jnp.float32)

    out = cnn_forward(q, p, torch_params)
    jax.block_until_ready(out.dq_dt)
    jax.block_until_ready(out.dp_dt)

    dq_ref, dp_ref = reference_forward(q, p, torch_params)
    assert out.dq_dt.shape == q.shape and out.dp_dt.shape == p.shape
    assert jnp.allclose(out.dq_dt, dq_ref, atol=1e-5, rtol=1e-5)
    assert jnp.allclose(out.dp_dt, dp_ref, atol=1e-5, rtol=1e-5)

    # --- larger batch exercises the lane-packed path (B_blk = 8) ------------
    key, kq2, kp2 = jax.random.split(key, 3)
    N2 = 16
    q2 = jax.random.normal(kq2, (N2, L, Cq), jnp.float32)
    p2 = jax.random.normal(kp2, (N2, L, Cp), jnp.float32)

    out2 = cnn_forward(q2, p2, torch_params)
    jax.block_until_ready(out2.dq_dt)
    dq_ref2, dp_ref2 = reference_forward(q2, p2, torch_params)
    assert jnp.allclose(out2.dq_dt, dq_ref2, atol=1e-5, rtol=1e-5)
    assert jnp.allclose(out2.dp_dt, dp_ref2, atol=1e-5, rtol=1e-5)

    print("KERNEL_OK")
</pallas_src>

<mosaic_0001>
module attributes {stable_mosaic.version = 11 : i64} {
  func.func @kernel(%arg0: i32, %arg1: memref<1x128xi32, #tpu.memory_space<vmem>>, %arg2: memref<1x8x128xf32, #tpu.memory_space<vmem>>, %arg3: memref<3x8x8xf32, #tpu.memory_space<vmem>>, %arg4: memref<8x1xf32, #tpu.memory_space<vmem>>, %arg5: memref<3x8x8xf32, #tpu.memory_space<vmem>>, %arg6: memref<8x1xf32, #tpu.memory_space<vmem>>, %arg7: memref<1x8x128xf32, #tpu.memory_space<vmem>>) attributes {dimension_semantics = [#tpu.dimension_semantics<parallel>], iteration_bounds = array<i64: 2>, scalar_prefetch = 0 : i64, scratch_operands = 0 : i64, tpu.core_type = #tpu.core_type<tc>, window_params = [{pipeline_mode = #tpu.pipeline_mode<synchronous>, transform_indices = @transform_0, window_bounds = array<i64: 1, 128>}, {transform_indices = @transform_1, window_bounds = array<i64: 1, 8, 128>}, {pipeline_mode = #tpu.pipeline_mode<synchronous>, transform_indices = @transform_2, window_bounds = array<i64: 3, 8, 8>}, {pipeline_mode = #tpu.pipeline_mode<synchronous>, transform_indices = @transform_3, window_bounds = array<i64: 8, 1>}, {pipeline_mode = #tpu.pipeline_mode<synchronous>, transform_indices = @transform_4, window_bounds = array<i64: 3, 8, 8>}, {pipeline_mode = #tpu.pipeline_mode<synchronous>, transform_indices = @transform_5, window_bounds = array<i64: 8, 1>}, {transform_indices = @transform_6, window_bounds = array<i64: 1, 8, 128>}]} {
    %c0 = arith.constant 0 : index
    %c0_0 = arith.constant 0 : index
    %0 = vector.load %arg1[%c0, %c0_0] : memref<1x128xi32, #tpu.memory_space<vmem>>, vector<1x128xi32>
    %c1_i32 = arith.constant 1 : i32
    %1 = vector.broadcast %c1_i32 : i32 to vector<1x128xi32>
    %2 = arith.cmpi sge, %0, %1 : vector<1x128xi32>
    %c15_i32 = arith.constant 15 : i32
    %3 = vector.broadcast %c15_i32 : i32 to vector<1x128xi32>
    %4 = arith.cmpi slt, %0, %3 : vector<1x128xi32>
    %c0_1 = arith.constant 0 : index
    %c0_2 = arith.constant 0 : index
    %c0_3 = arith.constant 0 : index
    %5 = vector.load %arg2[%c0_1, %c0_2, %c0_3] : memref<1x8x128xf32, #tpu.memory_space<vmem>>, vector<1x8x128xf32>
    %6 = vector.shape_cast %5 : vector<1x8x128xf32> to vector<8x128xf32>
    %c0_4 = arith.constant 0 : index
    %c0_5 = arith.constant 0 : index
    %7 = vector.load %arg4[%c0_4, %c0_5] : memref<8x1xf32, #tpu.memory_space<vmem>>, vector<8x1xf32>
    %c1_i32_6 = arith.constant 1 : i32
    %8 = tpu.dynamic_rotate %6 by %c1_i32_6 dim 1 : vector<8x128xf32>, i32 -> vector<8x128xf32>
    %cst = arith.constant 0.000000e+00 : f32
    %9 = vector.shape_cast %2 : vector<1x128xi1> to vector<1x128xi1>
    %10 = vector.broadcast %9 : vector<1x128xi1> to vector<8x128xi1>
    %11 = vector.broadcast %cst : f32 to vector<8x128xf32>
    %12 = arith.select %10, %8, %11 : vector<8x128xi1>, vector<8x128xf32>
    %c0_7 = arith.constant 0 : index
    %c0_8 = arith.constant 0 : index
    %c0_9 = arith.constant 0 : index
    %13 = vector.load %arg3[%c0_7, %c0_8, %c0_9] : memref<3x8x8xf32, #tpu.memory_space<vmem>>, vector<1x8x8xf32>
    %14 = vector.shape_cast %13 : vector<1x8x8xf32> to vector<8x8xf32>
    %cst_10 = arith.constant dense<0.000000e+00> : vector<8x128xf32>
    %15 = tpu.matmul %14, %12, %cst_10 {dimension_numbers = #tpu.dot_dimension_numbers<[1], [0], [0], [1], [0, 0, 1, 1], [], []>} : vector<8x8xf32>, vector<8x128xf32>, vector<8x128xf32> -> vector<8x128xf32>
    %c1 = arith.constant 1 : index
    %c0_11 = arith.constant 0 : index
    %c0_12 = arith.constant 0 : index
    %16 = vector.load %arg3[%c1, %c0_11, %c0_12] : memref<3x8x8xf32, #tpu.memory_space<vmem>>, vector<1x8x8xf32>
    %17 = vector.shape_cast %16 : vector<1x8x8xf32> to vector<8x8xf32>
    %cst_13 = arith.constant dense<0.000000e+00> : vector<8x128xf32>
    %18 = tpu.matmul %17, %6, %cst_13 {dimension_numbers = #tpu.dot_dimension_numbers<[1], [0], [0], [1], [0, 0, 1, 1], [], []>} : vector<8x8xf32>, vector<8x128xf32>, vector<8x128xf32> -> vector<8x128xf32>
    %19 = arith.addf %15, %18 : vector<8x128xf32>
    %c127_i32 = arith.constant 127 : i32
    %20 = tpu.dynamic_rotate %6 by %c127_i32 dim 1 : vector<8x128xf32>, i32 -> vector<8x128xf32>
    %cst_14 = arith.constant 0.000000e+00 : f32
    %21 = vector.shape_cast %4 : vector<1x128xi1> to vector<1x128xi1>
    %22 = vector.broadcast %21 : vector<1x128xi1> to vector<8x128xi1>
    %23 = vector.broadcast %cst_14 : f32 to vector<8x128xf32>
    %24 = arith.select %22, %20, %23 : vector<8x128xi1>, vector<8x128xf32>
    %c2 = arith.constant 2 : index
    %c0_15 = arith.constant 0 : index
    %c0_16 = arith.constant 0 : index
    %25 = vector.load %arg3[%c2, %c0_15, %c0_16] : memref<3x8x8xf32, #tpu.memory_space<vmem>>, vector<1x8x8xf32>
    %26 = vector.shape_cast %25 : vector<1x8x8xf32> to vector<8x8xf32>
    %cst_17 = arith.constant dense<0.000000e+00> : vector<8x128xf32>
    %27 = tpu.matmul %26, %24, %cst_17 {dimension_numbers = #tpu.dot_dimension_numbers<[1], [0], [0], [1], [0, 0, 1, 1], [], []>} : vector<8x8xf32>, vector<8x128xf32>, vector<8x128xf32> -> vector<8x128xf32>
    %28 = arith.addf %19, %27 : vector<8x128xf32>
    %29 = vector.broadcast %7 : vector<8x1xf32> to vector<8x128xf32>
    %30 = arith.addf %28, %29 : vector<8x128xf32>
    %cst_18 = arith.constant 0.000000e+00 : f32
    %31 = vector.broadcast %cst_18 : f32 to vector<8x128xf32>
    %32 = arith.maximumf %30, %31 : vector<8x128xf32>
    %c0_19 = arith.constant 0 : index
    %c0_20 = arith.constant 0 : index
    %33 = vector.load %arg6[%c0_19, %c0_20] : memref<8x1xf32, #tpu.memory_space<vmem>>, vector<8x1xf32>
    %c1_i32_21 = arith.constant 1 : i32
    %34 = tpu.dynamic_rotate %32 by %c1_i32_21 dim 1 : vector<8x128xf32>, i32 -> vector<8x128xf32>
    %cst_22 = arith.constant 0.000000e+00 : f32
    %35 = vector.shape_cast %2 : vector<1x128xi1> to vector<1x128xi1>
    %36 = vector.broadcast %35 : vector<1x128xi1> to vector<8x128xi1>
    %37 = vector.broadcast %cst_22 : f32 to vector<8x128xf32>
    %38 = arith.select %36, %34, %37 : vector<8x128xi1>, vector<8x128xf32>
    %c0_23 = arith.constant 0 : index
    %c0_24 = arith.constant 0 : index
    %c0_25 = arith.constant 0 : index
    %39 = vector.load %arg5[%c0_23, %c0_24, %c0_25] : memref<3x8x8xf32, #tpu.memory_space<vmem>>, vector<1x8x8xf32>
    %40 = vector.shape_cast %39 : vector<1x8x8xf32> to vector<8x8xf32>
    %cst_26 = arith.constant dense<0.000000e+00> : vector<8x128xf32>
    %41 = tpu.matmul %40, %38, %cst_26 {dimension_numbers = #tpu.dot_dimension_numbers<[1], [0], [0], [1], [0, 0, 1, 1], [], []>} : vector<8x8xf32>, vector<8x128xf32>, vector<8x128xf32> -> vector<8x128xf32>
    %c1_27 = arith.constant 1 : index
    %c0_28 = arith.constant 0 : index
    %c0_29 = arith.constant 0 : index
    %42 = vector.load %arg5[%c1_27, %c0_28, %c0_29] : memref<3x8x8xf32, #tpu.memory_space<vmem>>, vector<1x8x8xf32>
    %43 = vector.shape_cast %42 : vector<1x8x8xf32> to vector<8x8xf32>
    %cst_30 = arith.constant dense<0.000000e+00> : vector<8x128xf32>
    %44 = tpu.matmul %43, %32, %cst_30 {dimension_numbers = #tpu.dot_dimension_numbers<[1], [0], [0], [1], [0, 0, 1, 1], [], []>} : vector<8x8xf32>, vector<8x128xf32>, vector<8x128xf32> -> vector<8x128xf32>
    %45 = arith.addf %41, %44 : vector<8x128xf32>
    %c127_i32_31 = arith.constant 127 : i32
    %46 = tpu.dynamic_rotate %32 by %c127_i32_31 dim 1 : vector<8x128xf32>, i32 -> vector<8x128xf32>
    %cst_32 = arith.constant 0.000000e+00 : f32
    %47 = vector.shape_cast %4 : vector<1x128xi1> to vector<1x128xi1>
    %48 = vector.broadcast %47 : vector<1x128xi1> to vector<8x128xi1>
    %49 = vector.broadcast %cst_32 : f32 to vector<8x128xf32>
    %50 = arith.select %48, %46, %49 : vector<8x128xi1>, vector<8x128xf32>
    %c2_33 = arith.constant 2 : index
    %c0_34 = arith.constant 0 : index
    %c0_35 = arith.constant 0 : index
    %51 = vector.load %arg5[%c2_33, %c0_34, %c0_35] : memref<3x8x8xf32, #tpu.memory_space<vmem>>, vector<1x8x8xf32>
    %52 = vector.shape_cast %51 : vector<1x8x8xf32> to vector<8x8xf32>
    %cst_36 = arith.constant dense<0.000000e+00> : vector<8x128xf32>
    %53 = tpu.matmul %52, %50, %cst_36 {dimension_numbers = #tpu.dot_dimension_numbers<[1], [0], [0], [1], [0, 0, 1, 1], [], []>} : vector<8x8xf32>, vector<8x128xf32>, vector<8x128xf32> -> vector<8x128xf32>
    %54 = arith.addf %45, %53 : vector<8x128xf32>
    %55 = vector.broadcast %33 : vector<8x1xf32> to vector<8x128xf32>
    %56 = arith.addf %54, %55 : vector<8x128xf32>
    %c0_37 = arith.constant 0 : index
    %c0_38 = arith.constant 0 : index
    %c0_39 = arith.constant 0 : index
    %57 = vector.load %arg7[%c0_37, %c0_38, %c0_39] : memref<1x8x128xf32, #tpu.memory_space<vmem>>, vector<1x8x128xf32>
    %58 = vector.shape_cast %57 : vector<1x8x128xf32> to vector<8x128xf32>
    %59 = vector.shape_cast %56 : vector<8x128xf32> to vector<1x8x128xf32>
    tpu.vector_store %arg7[%c0_37, %c0_38, %c0_39], %59 {strides = array<i32>} : memref<1x8x128xf32, #tpu.memory_space<vmem>>, vector<1x8x128xf32>,
    return
  }
  func.func @transform_0(%arg0: i32) -> (i32, i32) {
    %c0_i32 = arith.constant 0 : i32
    %c0_i32_0 = arith.constant 0 : i32
    %c0_i32_1 = arith.constant 0 : i32
    return %c0_i32, %c0_i32_0 : i32, i32
  }
  func.func @transform_1(%arg0: i32) -> (i32, i32, i32) {
    %c0_i32 = arith.constant 0 : i32
    %c0_i32_0 = arith.constant 0 : i32
    %c0_i32_1 = arith.constant 0 : i32
    return %arg0, %c0_i32, %c0_i32_0 : i32, i32, i32
  }
  func.func @transform_2(%arg0: i32) -> (i32, i32, i32) {
    %c0_i32 = arith.constant 0 : i32
    %c0_i32_0 = arith.constant 0 : i32
    %c0_i32_1 = arith.constant 0 : i32
    %c0_i32_2 = arith.constant 0 : i32
    return %c0_i32, %c0_i32_0, %c0_i32_1 : i32, i32, i32
  }
  func.func @transform_3(%arg0: i32) -> (i32, i32) {
    %c0_i32 = arith.constant 0 : i32
    %c0_i32_0 = arith.constant 0 : i32
    %c0_i32_1 = arith.constant 0 : i32
    return %c0_i32, %c0_i32_0 : i32, i32
  }
  func.func @transform_4(%arg0: i32) -> (i32, i32, i32) {
    %c0_i32 = arith.constant 0 : i32
    %c0_i32_0 = arith.constant 0 : i32
    %c0_i32_1 = arith.constant 0 : i32
    %c0_i32_2 = arith.constant 0 : i32
    return %c0_i32, %c0_i32_0, %c0_i32_1 : i32, i32, i32
  }
  func.func @transform_5(%arg0: i32) -> (i32, i32) {
    %c0_i32 = arith.constant 0 : i32
    %c0_i32_0 = arith.constant 0 : i32
    %c0_i32_1 = arith.constant 0 : i32
    return %c0_i32, %c0_i32_0 : i32, i32
  }
  func.func @transform_6(%arg0: i32) -> (i32, i32, i32) {
    %c0_i32 = arith.constant 0 : i32
    %c0_i32_0 = arith.constant 0 : i32
    %c0_i32_1 = arith.constant 0 : i32
    return %arg0, %c0_i32, %c0_i32_0 : i32, i32, i32
  }
}

</mosaic_0001>

<bundles_post_ra>
// kernel: tpu_custom_call.1
= control target key start
LH: loop header
LB: loop body
LE: loop exit
PB: predicated region body
PF: predicated region fallthrough
CT: control target
= control target key end

     0   :  { %11 = vsyncpa [#allocation3], 0  ;;  %s978_s0 = inlined_call_operand.vmem [shape: s32[1,128], index: 0, kind: input, shape index: {}]   ;;  %s979_s1 = inlined_call_operand.vmem [shape: f32[2,8,128], index: 1, kind: input, shape index: {}]   ;;  %s980_s2 = inlined_call_operand.hbm [shape: f32[3,8,8], index: 2, kind: input, shape index: {}]   ;;  %s981_s3 = inlined_call_operand.vmem [shape: f32[8,1], index: 3, kind: input, shape index: {}]   ;;  %s982_s4 = inlined_call_operand.hbm [shape: f32[3,8,8], index: 4, kind: input, shape index: {}]   ;;  %s983_s5 = inlined_call_operand.vmem [shape: f32[8,1], index: 5, kind: input, shape index: {}]   ;;  %s984_s6 = inlined_call_operand.hbm [shape: f32[2,8,128], index: 6, kind: output, shape index: {}]  }
   0x1   :  { %12 = vsyncpa [#allocation6], 0 }
   0x2   :  { %13 = vsyncpa [#allocation4], 0 }
   0x3   :  { %15 = vsyncpa [#allocation4 + $0x1], 0  ;;  %s833_s21 = smov 0   ;;  %s835_s22 = smov 0  }
   0x4   :  { %s837_s23 = smov 0   ;;  %s839_s24 = smov 0  }
   0x5 LB: > { %s854_s25 = sadd.s32 4294967295, %s789_s24   ;;  %s567_s26 = sadd.s32 4294967294, %s789_s24   ;;  %s789_s24 = sphi %s839_s24, %s995_s24   ;;  %s785_s23 = sphi %s837_s23, %s994_s23   ;;  %s781_s22 = sphi %s835_s22, %s993_s22   ;;  %s777_s21 = sphi %s833_s21, %s992_s21  }
   0x6   : > { %s858_s27 = sadd.s32 1, %s789_s24   ;;  %s159_s28 = sadd.s32 1, %s785_s23 }
   0x7   : > { %s156_s29 = ssub.s32 %s789_s24, %s858_s27  ;;  %p169_p0 = scmp.ne.s32.totalorder %s785_s23, %s781_s22 }
   0x8   : > { %p157_p1 = scmp.eq.s32.totalorder %s156_s29, 0  ;;  %p170_p2 = scmp.eq.s32.totalorder %s854_s25, 1 }
   0x9   : > { %p175_p3 = scmp.ne.s32.totalorder %s781_s22, %s777_s21  ;;  %p176_p4 = scmp.eq.s32.totalorder %s567_s26, 1 }
   0xa   : > { %s869_s30 = scalar_select %p157_p1, %s785_s23, %s159_s28  }
   0xb   : > { %p871_p5 = por %p170_p2, %p169_p0  ;;  %p875_p6 = por %p176_p4, %p175_p3 }
   0xc   : > { %p568_p7 = scmp.ge.s32.totalorder %s789_s24, 1  ;;  %p183_p8 = scmp.lt.s32.totalorder %s789_s24, 3 }
   0xd   : > { %p612_p9 = scmp.eq.s32.totalorder %s854_s25, 0  ;;  %s197_s12 = sshll.u32 %s980_s2, 4  ;;  %s198_s12 = int_to_ptr.hbm [resolvable:$true] %s197_s12 }
   0xe   : > { %p882_p10 = pnand %p568_p7, %p183_p8  ;;  %s791_s13 = smov [#allocation2]  }
   0xf   : > { %s199_s14 = sshll.u32 %s791_s13, 4  ;;  %s214_s17 = sshll.u32 %s982_s4, 4  ;;  %s200_s14 = int_to_ptr.vmem [resolvable:$true] %s199_s14  ;;  %s215_s17 = int_to_ptr.hbm [resolvable:$true] %s214_s17 }
  0x10   : > { %p601_p11 = pneg %p882_p10  ;;  %s792_s18 = smov 128  }
  0x11   : > { %s793_s19 = smov 8   ;;  %s794_s20 = smov [#allocation5]  }
  0x12   : > { %p602_p12 = pnand %p612_p9, %p601_p11  ;;  %s216_s26 = sshll.u32 %s794_s20, 4  ;;  %s217_s26 = int_to_ptr.vmem [resolvable:$true] %s216_s26 }
  0x13   : > { %242 = sbr.rel (%p882_p10) target bundleno = 543 (0x21f), region = 44 }
  0x14   : > { %604 = dma.hbm_to_vmem [thread:$0]  (!%p602_p12), %s198_s12, 384, %s200_s14, [#allocation3], %s792_s18, %s792_s18, %s793_s19  }
  0x15   : > { %607 = dma.hbm_to_vmem [thread:$0]  (!%p602_p12), %s215_s17, 384, %s217_s26, [#allocation6], %s792_s18, %s792_s18, %s793_s19  }
  0x18   : > { %764 = dma.done.wait (%p612_p9), [#allocation3], 384  }
  0x19   : > { %766 = vsyncadd (%p612_p9), [#allocation3], 4294966912 }
  0x1a   : > { %768 = dma.done.wait (%p612_p9), [#allocation6], 384  }
  0x1b   : > { %770 = vsyncadd (%p612_p9), [#allocation6], 4294966912  ;;  %p277_p13 = scmp.lt.s32.totalorder %s854_s25, 1  ;;  %s795_s12 = smov 127   ;;  %v797_v1 = vmov 0   ;;  %vm295_vm0 = vcmask 64512  }
  0x1c   : > { %s796_s13 = smov 1   ;;  %656 = vset.pattern.permute.xlu1 %v797_v1  ;;  %657 = vset.pattern.permute.xlu2 %v797_v1  ;;  %v294_v2 = vld [vmem:[#allocation2 + $0x8] sm:$0xff]  ;;  %v285_v3 = vld [vmem:[%s981_s3] sm:$0xff]  ;;  %v349_v8 = vld [vmem:[#allocation2 + $0x10] sm:$0xff]  ;;  %s274_s20 = sand.u32 1, %s781_s22  }
  0x1d   : > { %s278_s28 = scalar_select %p277_p13, %s854_s25, 1  ;;  %658 = vset.pattern.permute.xlu0 %v797_v1  ;;  %376 = vperm.xlu1 %656, %v285_v3   ;;  %v281_v4 = vld [vmem:[%s978_s0] sm:$0x1]  ;;  %v438_v25 = vld [vmem:[#allocation5 + $0x10] sm:$0xff]  ;;  %v385_v27 = vld [vmem:[#allocation5] sm:$0xff] }
  0x1e   : > { %vm283_vm1 = vcmp.lt.s32.totalorder %v281_v4, 15  ;;  %vm282_vm2 = vcmp.ge.s32.totalorder %v281_v4, 1  ;;  %v292_v13 = vld [vmem:[#allocation2] sm:$0xff]  ;;  %s575_s26 = sshll.u32 %s274_s20, 3  ;;  %s471_s14 = scalar_lea.sflag [#allocation4], %s274_s20 }
  0x1f   : > { %s576_s29 = sshll.u32 %s278_s28, 3  ;;  %v344_v5 = vsel %vm283_vm1, 1, %v797_v1  ;;  %v288_v9 = vsel %vm282_vm2, 1, %v797_v1  ;;  %v387_v23 = vld [vmem:[#allocation5 + $0x8] sm:$0xff]  ;;  %s588_s28 = sshll.u32 %s854_s25, 3 }
  0x20   : > { %s280_s11 = scalar_lea.vmem %s979_s1, %s576_s29  ;;  %v345_v6 = vperm.slane %v344_v5, 0  ;;  %v289_v11 = vperm.slane %v288_v9, 0  ;;  %v381_v24 = vld [vmem:[%s983_s5] sm:$0xff]  ;;  %s481_s9 = scalar_lea.hbm %s984_s6, %s588_s28 }
  0x21   : > { %v284_v0 = vld [vmem:[%s280_s11] sm:$0xff]  ;;  %s276_s11 = scalar_lea.vmem [#allocation7], %s575_s26  ;;  %s739_s18 = scalar_lea.hbm %s984_s6, 16 }
  0x22   : > { %342 = vrot.lane.b32.xlu0 %v284_v0, %s795_s12  ;;  %314 = vmatpush.msra.mxu0 %v284_v0  ;;  %vm920_vm3 = vcmp.eq.s32.totalorder %v345_v6, 1  ;;  %vm927_vm4 = vcmp.eq.s32.totalorder %v289_v11, 1 }
  0x23   : > { %577 = vmatmul.msk.f32.vlgmr.msra.gmra.mxu0 %vm295_vm0, %v294_v2 }
  0x2a   : > { %286 = vrot.lane.b32.xlu0 %v284_v0, %s796_s13 }
  0x8f   : > { %v377_v19 = vpop.permute.xlu1 %376 }
  0x94   : > { %v343_v10 = vpop.permute.xlu0 %342 }
  0x95   : > { %580 = vmatpush.msk.msra.mxu2 %vm920_vm3, %v343_v10 }
  0x96   : > { %581 = vmatmul.msk.f32.vlgmr.msra.gmra.mxu2 %vm295_vm0, %v349_v8 }
  0x9c   : > { %v287_v14 = vpop.permute.xlu0 %286 }
  0x9d   : > { %578 = vmatpush.msk.msra.mxu1 %vm927_vm4, %v287_v14 }
  0x9e   : > { %579 = vmatmul.msk.f32.vlgmr.msra.gmra.mxu1 %vm295_vm0, %v292_v13 }
  0xa0   : > { %v316_v15 = vpop.f32.mrf.mxu0 }
 0x119   : > { %v370_v17 = vpop.f32.mrf.mxu2 }
 0x11b   : > { %v339_v16 = vpop.f32.mrf.mxu1 }
 0x11c   : > { %v340_v18 = vadd.f32 %v339_v16, %v316_v15 }
 0x11e   : > { %v373_v20 = vadd.f32 %v370_v17, %v340_v18 }
 0x120   : > { %v379_v21 = vadd.f32 %v377_v19, %v373_v20 }
 0x122   : > { %v380_v22 = vmax.f32 %v379_v21, 0.0 }
 0x124   : > { %434 = vrot.lane.b32.xlu2 %v380_v22, %s795_s12  ;;  %382 = vrot.lane.b32.xlu1 %v380_v22, %s796_s13  ;;  %s483_s12 = sshll.u32 %s276_s11, 4  ;;  %s485_s13 = sshll.u32 %s481_s9, 4  ;;  %s484_s12 = int_to_ptr.vmem [resolvable:$true] %s483_s12  ;;  %s486_s13 = int_to_ptr.hbm [resolvable:$true] %s485_s13 }
 0x125   : > { %406 = vmatpush.msra.mxu3 %v380_v22  ;;  %s733_s25 = sshra.s32 %s486_s13, 4  ;;  %s734_s25 = int_to_ptr.hbm [resolvable:$true] %s733_s25 }
 0x126   : > { %582 = vmatmul.msk.f32.vlgmr.msra.gmra.mxu3 %vm295_vm0, %v387_v23  ;;  %s735_s15 = scalar_lea.hbm %s734_s25, 8  ;;  %p740_p3 = scmp.lt.s32.totalorder %s734_s25, %s984_s6 }
 0x127   : > { %p736_p0 = scmp.ne.s32.totalorder %s734_s25, %s735_s15  ;;  %p741_p4 = scmp.lt.s32.totalorder %s739_s18, %s735_s15 }
 0x129   : > { %p737_p1 = pnand %p736_p0, %p871_p5  ;;  %p742_p7 = por %p741_p4, %p740_p3 }
 0x12b   : > { %p738_p2 = pneg %p737_p1 }
 0x12c   : > { %465 = vperm.xlu2 %657, %v381_v24  }
 0x12d   : > { %p743_p8 = pnand %p742_p7, %p738_p2 }
 0x17e   : > { %v435_v26 = vpop.permute.xlu2 %434 }
 0x17f   : > { %585 = vmatpush.msk.msrb.mxu1 %vm920_vm3, %v435_v26 }
 0x180   : > { %586 = vmatmul.msk.f32.vlgmr.msrb.gmra.mxu1 %vm295_vm0, %v438_v25 }
 0x186   : > { %v466_v33 = vpop.permute.xlu2 %465 }
 0x196   : > { %v383_v28 = vpop.permute.xlu1 %382 }
 0x197   : > { %583 = vmatpush.msk.msrb.mxu0 %vm927_vm4, %v383_v28 }
 0x198   : > { %584 = vmatmul.msk.f32.vlgmr.msrb.gmra.mxu0 %vm295_vm0, %v385_v27 }
 0x1a9   : > { %v408_v29 = vpop.f32.mrf.mxu3 }
 0x1fd   : > { %v459_v31 = vpop.f32.mrf.mxu1 }
 0x215   : > { %v431_v30 = vpop.f32.mrf.mxu0 }
 0x216   : > { %v432_v32 = vadd.f32 %v431_v30, %v408_v29 }
 0x218   : > { %v462_v34 = vadd.f32 %v459_v31, %v432_v32 }
 0x21a   : > { %v468_v35 = vadd.f32 %v466_v33, %v462_v34 }
 0x21c   : > { %469 = vst [vmem:[%s276_s11] sm:$0xff] %v468_v35 }
 0x21d   : > { %746 = shalt.err (!%p743_p8)
}
 0x21e   : > { %599 = dma.vmem_to_hbm [thread:$0]  (%p871_p5), %s484_s12, 128, %s486_s13, %s471_s14  }
 0x21f PF: > { %p616_p9 = scmp.ge.s32.totalorder %s789_s24, 2  ;;  %s497_s20 = sand.u32 1, %s777_s21  }
 0x220   : > { %s498_s28 = scalar_lea.sflag [#allocation4], %s497_s20 }
 0x221   : > { %p609_p10 = pnand %p616_p9, %p875_p6 }
 0x223   : > { %p610_p11 = pneg %p609_p10 }
 0x225   : > { %772 = dma.done.wait (%p610_p11), %s498_s28, 128  }
 0x226   : > { %774 = vsyncadd (%p610_p11), %s498_s28, 4294967168  ;;  %p18_p12 = scmp.ge.s32.totalorder %s858_s27, 4   ;;  %s992_s21 = smov %s781_s22 }
 0x227   : > { %s993_s22 = smov %s785_s23  ;;  %s994_s23 = smov %s869_s30 }
 0x228   : > { %s995_s24 = smov %s858_s27  ;;  %20 = sbr.rel (!%p18_p12) target bundleno = 5 (0x5), region = 92 }
 0x22d   :  { %504 = vsyncpa [#allocation3], 1 }
 0x22e   :  { %506 = vsyncpa [#allocation3 + $0x1], 1 }
 0x22f   :  { %507 = vsyncpa [#allocation6], 1 }
 0x230   :  { %508 = vsyncpa [#allocation4], 1 }
 0x231   :  { %510 = vsyncpa [#allocation4 + $0x1], 1 }

</bundles_post_ra>
